<compile_context>
chip_gen: v7x
topology: tpu7x:2x2x1
jax: 0.10.0
libtpu: 0.0.40
codegen_flags: <defaults>
</compile_context>

<pallas_src>
import functools

import jax
import jax.numpy as jnp
from jax.experimental import pallas as pl
from jax.experimental.pallas import tpu as pltpu


def _round_up(x, m):
    return ((x + m - 1) // m) * m


def mlp_kernel(x_ref, w_in_ref, b_in_ref, w_hid_ref, b_hid_ref,
               w_out_ref, b_out_ref, o_ref, *, num_hidden):
    # x tile is bf16 (pre-cast in wrapper); weights are bf16; accumulate f32.
    x = x_ref[...]                                                   # (TB, Fp) bf16

    # First linear (no activation after it, per the PyTorch module).
    h = jnp.dot(x, w_in_ref[...],
                preferred_element_type=jnp.float32) + b_in_ref[...]  # (TB, Hp) f32

    # Hidden blocks: Linear -> ReLU -> Dropout(identity in eval).
    for l in range(num_hidden):                                      # static unroll
        h = jnp.dot(h.astype(jnp.bfloat16), w_hid_ref[l],
                    preferred_element_type=jnp.float32) + b_hid_ref[l]
        h = jnp.maximum(h, 0.0)

    # Final linear.
    out = jnp.dot(h.astype(jnp.bfloat16), w_out_ref[...],
                  preferred_element_type=jnp.float32) + b_out_ref[...]  # (TB, Tp)
    o_ref[...] = out.astype(o_ref.dtype)


def mlp_forward(x, w_in, b_in, w_hid, b_hid, w_out, b_out, *, batch_tile=512):
    B, F = x.shape
    H = w_in.shape[1]
    L = int(w_hid.shape[0])
    T = w_out.shape[1]

    # Lane-dense padded dims.
    Fp = _round_up(F, 128)
    Hp = _round_up(H, 128)
    Tp = _round_up(T, 128)

    # Batch tiling (sublane-aligned).
    TB = min(batch_tile, _round_up(B, 8))
    Bp = _round_up(B, TB)
    grid = (Bp // TB,)

    pad2 = lambda a, r, c: jnp.pad(a, ((0, r - a.shape[0]), (0, c - a.shape[1])))

    # Activations pre-cast to bf16 (halves DMA traffic); biases stay f32.
    xp = pad2(x, Bp, Fp).astype(jnp.bfloat16)
    w_in_p = pad2(w_in, Fp, Hp).astype(jnp.bfloat16)
    b_in_p = pad2(b_in, 1, Hp).astype(jnp.float32)
    w_out_p = pad2(w_out, Hp, Tp).astype(jnp.bfloat16)
    b_out_p = pad2(b_out, 1, Tp).astype(jnp.float32)

    if L > 0:
        w_hid_p = jnp.pad(w_hid, ((0, 0), (0, Hp - H), (0, Hp - H))).astype(jnp.bfloat16)
        b_hid_p = jnp.pad(b_hid, ((0, 0), (0, 0), (0, Hp - H))).astype(jnp.float32)
    else:
        # Zero-extent leading dims don't lower cleanly; pass a tiny dummy stack
        # the kernel never touches (num_hidden=0 unrolls to an empty loop).
        w_hid_p = jnp.zeros((1, Hp, Hp), jnp.bfloat16)
        b_hid_p = jnp.zeros((1, 1, Hp), jnp.float32)

    # Weight-resident specs: same block returned for every batch-grid step.
    resident = lambda a: pl.BlockSpec(a.shape, lambda i: (0,) * a.ndim)

    # Advisory cost estimate for XLA scheduling.
    flops = 2 * B * (F * H + L * H * H + H * T)
    bytes_accessed = (xp.size * 2 + Bp * Tp * 4
                      + 2 * (w_in_p.size + w_hid_p.size + w_out_p.size)
                      + 4 * (b_in_p.size + b_hid_p.size + b_out_p.size))

    # VMEM budget: resident bf16 weights + f32 biases + double-buffered tiles.
    # Sized against v7x's 64 MiB physical VMEM (cap well below it).
    weight_bytes = 2 * (w_in_p.size + w_hid_p.size + w_out_p.size)
    bias_bytes = 4 * (b_in_p.size + b_hid_p.size + b_out_p.size)
    act_bytes = 2 * TB * (2 * Fp + 4 * Tp)   # double-buffered bf16 x tile + f32 out tile
    vmem_limit = int(min(60 * 2**20,
                         max(32 * 2**20, 2 * (weight_bytes + bias_bytes + act_bytes))))

    out_p = pl.pallas_call(
        functools.partial(mlp_kernel, num_hidden=L),
        out_shape=jax.ShapeDtypeStruct((Bp, Tp), x.dtype),
        grid=grid,
        in_specs=[
            pl.BlockSpec((TB, Fp), lambda i: (i, 0)),   # streaming activations
            resident(w_in_p), resident(b_in_p),
            resident(w_hid_p), resident(b_hid_p),
            resident(w_out_p), resident(b_out_p),
        ],
        out_specs=pl.BlockSpec((TB, Tp), lambda i: (i, 0)),
        compiler_params=pltpu.CompilerParams(
            dimension_semantics=("parallel",),
            vmem_limit_bytes=vmem_limit),
        cost_estimate=pl.CostEstimate(
            flops=flops, transcendentals=0, bytes_accessed=bytes_accessed),
    )(xp, w_in_p, b_in_p, w_hid_p, b_hid_p, w_out_p, b_out_p)

    # Strip batch / lane padding outside the kernel.
    return out_p[:B, :T]


def init_params(key, n_features, num_fc_units, num_fc_layers, n_types):
    """Deterministic, PyTorch-Linear-like init; weights stored as [in, out]."""
    ks = jax.random.split(key, 3 + 2 * num_fc_layers + 3)
    it = iter(ks)

    def linear(kw, kb, fan_in, fan_out):
        bound = 1.0 / jnp.sqrt(fan_in)
        w = jax.random.uniform(kw, (fan_in, fan_out), jnp.float32, -bound, bound)
        b = jax.random.uniform(kb, (1, fan_out), jnp.float32, -bound, bound)
        return w, b

    w_in, b_in = linear(next(it), next(it), n_features, num_fc_units)

    w_hid_list, b_hid_list = [], []
    for _ in range(num_fc_layers):
        w, b = linear(next(it), next(it), num_fc_units, num_fc_units)
        w_hid_list.append(w)
        b_hid_list.append(b)
    if num_fc_layers > 0:
        w_hid = jnp.stack(w_hid_list)                     # (L, H, H)
        b_hid = jnp.stack(b_hid_list)                     # (L, 1, H)
    else:
        w_hid = jnp.zeros((0, num_fc_units, num_fc_units), jnp.float32)
        b_hid = jnp.zeros((0, 1, num_fc_units), jnp.float32)

    w_out, b_out = linear(next(it), next(it), num_fc_units, n_types)
    return w_in, b_in, w_hid, b_hid, w_out, b_out


def mlp_reference(x, w_in, b_in, w_hid, b_hid, w_out, b_out):
    h = x @ w_in + b_in
    for l in range(w_hid.shape[0]):
        h = jnp.maximum(h @ w_hid[l] + b_hid[l], 0.0)
    return h @ w_out + b_out


if __name__ == "__main__":
    # Small shapes consistent with the module's forward.
    batch = 8
    n_features = 32
    num_fc_units = 32
    num_fc_layers = 2
    n_types = 8
    dropout_rate = 0.5  # identity in eval mode

    key = jax.random.PRNGKey(0)
    kx, kp = jax.random.split(key)
    x = jax.random.normal(kx, (batch, n_features), jnp.float32)
    params = init_params(kp, n_features, num_fc_units, num_fc_layers, n_types)

    out = mlp_forward(x, *params)
    out = jax.block_until_ready(out)

    ref = mlp_reference(x, *params)
    assert out.shape == (batch, n_types)
    # bf16 matmul operands (f32 accumulation) vs f32 reference -> relaxed tol.
    assert jnp.allclose(out, ref, atol=5e-2, rtol=5e-2), \
        f"max abs diff {jnp.max(jnp.abs(out - ref))}"

    print("KERNEL_OK")
</pallas_src>

<mosaic_0001>
module attributes {stable_mosaic.version = 11 : i64} {
  func.func @mlp_kernel(%arg0: i32, %arg1: memref<8x128xbf16, #tpu.memory_space<vmem>>, %arg2: memref<128x128xbf16, #tpu.memory_space<vmem>>, %arg3: memref<1x128xf32, #tpu.memory_space<vmem>>, %arg4: memref<2x128x128xbf16, #tpu.memory_space<vmem>>, %arg5: memref<2x1x128xf32, #tpu.memory_space<vmem>>, %arg6: memref<128x128xbf16, #tpu.memory_space<vmem>>, %arg7: memref<1x128xf32, #tpu.memory_space<vmem>>, %arg8: memref<8x128xf32, #tpu.memory_space<vmem>>) attributes {dimension_semantics = [#tpu.dimension_semantics<parallel>], iteration_bounds = array<i64: 1>, scalar_prefetch = 0 : i64, scratch_operands = 0 : i64, tpu.core_type = #tpu.core_type<tc>, window_params = [{transform_indices = @transform_0, window_bounds = array<i64: 8, 128>}, {pipeline_mode = #tpu.pipeline_mode<synchronous>, transform_indices = @transform_1, window_bounds = array<i64: 128, 128>}, {pipeline_mode = #tpu.pipeline_mode<synchronous>, transform_indices = @transform_2, window_bounds = array<i64: 1, 128>}, {pipeline_mode = #tpu.pipeline_mode<synchronous>, transform_indices = @transform_3, window_bounds = array<i64: 2, 128, 128>}, {pipeline_mode = #tpu.pipeline_mode<synchronous>, transform_indices = @transform_4, window_bounds = array<i64: 2, 1, 128>}, {pipeline_mode = #tpu.pipeline_mode<synchronous>, transform_indices = @transform_5, window_bounds = array<i64: 128, 128>}, {pipeline_mode = #tpu.pipeline_mode<synchronous>, transform_indices = @transform_6, window_bounds = array<i64: 1, 128>}, {transform_indices = @transform_7, window_bounds = array<i64: 8, 128>}]} {
    %c0 = arith.constant 0 : index
    %c0_0 = arith.constant 0 : index
    %0 = vector.load %arg1[%c0, %c0_0] : memref<8x128xbf16, #tpu.memory_space<vmem>>, vector<8x128xbf16>
    %c0_1 = arith.constant 0 : index
    %c0_2 = arith.constant 0 : index
    %1 = vector.load %arg2[%c0_1, %c0_2] : memref<128x128xbf16, #tpu.memory_space<vmem>>, vector<128x128xbf16>
    %cst = arith.constant dense<0.000000e+00> : vector<8x128xf32>
    %2 = tpu.matmul %0, %1, %cst {dimension_numbers = #tpu.dot_dimension_numbers<[1], [0], [0], [1], [0, 0, 1, 1], [], []>} : vector<8x128xbf16>, vector<128x128xbf16>, vector<8x128xf32> -> vector<8x128xf32>
    %c0_3 = arith.constant 0 : index
    %c0_4 = arith.constant 0 : index
    %3 = vector.load %arg3[%c0_3, %c0_4] : memref<1x128xf32, #tpu.memory_space<vmem>>, vector<1x128xf32>
    %4 = vector.broadcast %3 : vector<1x128xf32> to vector<8x128xf32>
    %5 = arith.addf %2, %4 : vector<8x128xf32>
    %6 = arith.truncf %5 : vector<8x128xf32> to vector<8x128xbf16>
    %c0_5 = arith.constant 0 : index
    %c0_6 = arith.constant 0 : index
    %c0_7 = arith.constant 0 : index
    %7 = vector.load %arg4[%c0_5, %c0_6, %c0_7] : memref<2x128x128xbf16, #tpu.memory_space<vmem>>, vector<1x128x128xbf16>
    %8 = vector.shape_cast %7 : vector<1x128x128xbf16> to vector<128x128xbf16>
    %cst_8 = arith.constant dense<0.000000e+00> : vector<8x128xf32>
    %9 = tpu.matmul %6, %8, %cst_8 {dimension_numbers = #tpu.dot_dimension_numbers<[1], [0], [0], [1], [0, 0, 1, 1], [], []>} : vector<8x128xbf16>, vector<128x128xbf16>, vector<8x128xf32> -> vector<8x128xf32>
    %c0_9 = arith.constant 0 : index
    %c0_10 = arith.constant 0 : index
    %c0_11 = arith.constant 0 : index
    %10 = vector.load %arg5[%c0_9, %c0_10, %c0_11] : memref<2x1x128xf32, #tpu.memory_space<vmem>>, vector<1x1x128xf32>
    %11 = vector.shape_cast %10 : vector<1x1x128xf32> to vector<1x128xf32>
    %12 = vector.broadcast %11 : vector<1x128xf32> to vector<8x128xf32>
    %13 = arith.addf %9, %12 : vector<8x128xf32>
    %cst_12 = arith.constant 0.000000e+00 : f32
    %14 = vector.broadcast %cst_12 : f32 to vector<8x128xf32>
    %15 = arith.maximumf %13, %14 : vector<8x128xf32>
    %16 = arith.truncf %15 : vector<8x128xf32> to vector<8x128xbf16>
    %c1 = arith.constant 1 : index
    %c0_13 = arith.constant 0 : index
    %c0_14 = arith.constant 0 : index
    %17 = vector.load %arg4[%c1, %c0_13, %c0_14] : memref<2x128x128xbf16, #tpu.memory_space<vmem>>, vector<1x128x128xbf16>
    %18 = vector.shape_cast %17 : vector<1x128x128xbf16> to vector<128x128xbf16>
    %cst_15 = arith.constant dense<0.000000e+00> : vector<8x128xf32>
    %19 = tpu.matmul %16, %18, %cst_15 {dimension_numbers = #tpu.dot_dimension_numbers<[1], [0], [0], [1], [0, 0, 1, 1], [], []>} : vector<8x128xbf16>, vector<128x128xbf16>, vector<8x128xf32> -> vector<8x128xf32>
    %c1_16 = arith.constant 1 : index
    %c0_17 = arith.constant 0 : index
    %c0_18 = arith.constant 0 : index
    %20 = vector.load %arg5[%c1_16, %c0_17, %c0_18] : memref<2x1x128xf32, #tpu.memory_space<vmem>>, vector<1x1x128xf32>
    %21 = vector.shape_cast %20 : vector<1x1x128xf32> to vector<1x128xf32>
    %22 = vector.broadcast %21 : vector<1x128xf32> to vector<8x128xf32>
    %23 = arith.addf %19, %22 : vector<8x128xf32>
    %cst_19 = arith.constant 0.000000e+00 : f32
    %24 = vector.broadcast %cst_19 : f32 to vector<8x128xf32>
    %25 = arith.maximumf %23, %24 : vector<8x128xf32>
    %26 = arith.truncf %25 : vector<8x128xf32> to vector<8x128xbf16>
    %c0_20 = arith.constant 0 : index
    %c0_21 = arith.constant 0 : index
    %27 = vector.load %arg6[%c0_20, %c0_21] : memref<128x128xbf16, #tpu.memory_space<vmem>>, vector<128x128xbf16>
    %cst_22 = arith.constant dense<0.000000e+00> : vector<8x128xf32>
    %28 = tpu.matmul %26, %27, %cst_22 {dimension_numbers = #tpu.dot_dimension_numbers<[1], [0], [0], [1], [0, 0, 1, 1], [], []>} : vector<8x128xbf16>, vector<128x128xbf16>, vector<8x128xf32> -> vector<8x128xf32>
    %c0_23 = arith.constant 0 : index
    %c0_24 = arith.constant 0 : index
    %29 = vector.load %arg7[%c0_23, %c0_24] : memref<1x128xf32, #tpu.memory_space<vmem>>, vector<1x128xf32>
    %30 = vector.broadcast %29 : vector<1x128xf32> to vector<8x128xf32>
    %31 = arith.addf %28, %30 : vector<8x128xf32>
    %c0_25 = arith.constant 0 : index
    %c0_26 = arith.constant 0 : index
    %32 = vector.load %arg8[%c0_25, %c0_26] : memref<8x128xf32, #tpu.memory_space<vmem>>, vector<8x128xf32>
    tpu.vector_store %arg8[%c0_25, %c0_26], %31 {strides = array<i32>} : memref<8x128xf32, #tpu.memory_space<vmem>>, vector<8x128xf32>,
    return
  }
  func.func @transform_0(%arg0: i32) -> (i32, i32) {
    %c0_i32 = arith.constant 0 : i32
    %c0_i32_0 = arith.constant 0 : i32
    return %arg0, %c0_i32 : i32, i32
  }
  func.func @transform_1(%arg0: i32) -> (i32, i32) {
    %c0_i32 = arith.constant 0 : i32
    %c0_i32_0 = arith.constant 0 : i32
    %c0_i32_1 = arith.constant 0 : i32
    return %c0_i32, %c0_i32_0 : i32, i32
  }
  func.func @transform_2(%arg0: i32) -> (i32, i32) {
    %c0_i32 = arith.constant 0 : i32
    %c0_i32_0 = arith.constant 0 : i32
    %c0_i32_1 = arith.constant 0 : i32
    return %c0_i32, %c0_i32_0 : i32, i32
  }
  func.func @transform_3(%arg0: i32) -> (i32, i32, i32) {
    %c0_i32 = arith.constant 0 : i32
    %c0_i32_0 = arith.constant 0 : i32
    %c0_i32_1 = arith.constant 0 : i32
    %c0_i32_2 = arith.constant 0 : i32
    return %c0_i32, %c0_i32_0, %c0_i32_1 : i32, i32, i32
  }
  func.func @transform_4(%arg0: i32) -> (i32, i32, i32) {
    %c0_i32 = arith.constant 0 : i32
    %c0_i32_0 = arith.constant 0 : i32
    %c0_i32_1 = arith.constant 0 : i32
    %c0_i32_2 = arith.constant 0 : i32
    return %c0_i32, %c0_i32_0, %c0_i32_1 : i32, i32, i32
  }
  func.func @transform_5(%arg0: i32) -> (i32, i32) {
    %c0_i32 = arith.constant 0 : i32
    %c0_i32_0 = arith.constant 0 : i32
    %c0_i32_1 = arith.constant 0 : i32
    return %c0_i32, %c0_i32_0 : i32, i32
  }
  func.func @transform_6(%arg0: i32) -> (i32, i32) {
    %c0_i32 = arith.constant 0 : i32
    %c0_i32_0 = arith.constant 0 : i32
    %c0_i32_1 = arith.constant 0 : i32
    return %c0_i32, %c0_i32_0 : i32, i32
  }
  func.func @transform_7(%arg0: i32) -> (i32, i32) {
    %c0_i32 = arith.constant 0 : i32
    %c0_i32_0 = arith.constant 0 : i32
    return %arg0, %c0_i32 : i32, i32
  }
}

</mosaic_0001>

<bundles_post_ra>
// kernel: tpu_custom_call.1
= control target key start
LH: loop header
LB: loop body
LE: loop exit
PB: predicated region body
PF: predicated region fallthrough
CT: control target
= control target key end

     0   :  { %12 = vsyncpa [#allocation3], 0  ;;  %s1033_s0 = inlined_call_operand.hbm [shape: bf16[8,128], index: 0, kind: input, shape index: {}]   ;;  %s1034_s1 = inlined_call_operand.hbm [shape: bf16[128,128], index: 1, kind: input, shape index: {}]   ;;  %s1035_s2 = inlined_call_operand.vmem [shape: f32[1,128], index: 2, kind: input, shape index: {}]   ;;  %s1036_s3 = inlined_call_operand.hbm [shape: bf16[2,128,128], index: 3, kind: input, shape index: {}]   ;;  %s1037_s4 = inlined_call_operand.vmem [shape: f32[2,1,128], index: 4, kind: input, shape index: {}]   ;;  %s1038_s5 = inlined_call_operand.hbm [shape: bf16[128,128], index: 5, kind: input, shape index: {}]   ;;  %s1039_s6 = inlined_call_operand.vmem [shape: f32[1,128], index: 6, kind: input, shape index: {}]   ;;  %s1040_s7 = inlined_call_operand.hbm [shape: f32[8,128], index: 7, kind: output, shape index: {}]  }
   0x1   :  { %13 = vsyncpa [#allocation6], 0 }
   0x2   :  { %14 = vsyncpa [#allocation9], 0 }
   0x3   :  { %15 = vsyncpa [#allocation4], 0  ;;  %s863_s24 = smov [#allocation5]   ;;  %s745_s28 = scalar_lea.hbm %s1034_s1, 1024 }
   0x4   :  { %s31_s25 = sshll.u32 %s863_s24, 4  ;;  %p746_p0 = scmp.ne.s32.totalorder %s1034_s1, %s745_s28  ;;  %s32_s25 = int_to_ptr.vmem [resolvable:$true] %s31_s25 }
   0x5   :  { %p749_p1 = scmp.lt.u32.totalorder %s745_s28, %s1034_s1 }
   0x7   :  { %p751_p2 = pnand %p749_p1, %p746_p0 }
   0x9   :  { %754 = shalt.err (!%p751_p2)
}
   0xa   :  { %s755_s10 = scalar_lea.vmem %s32_s25, 1024  ;;  %p760_p4 = scmp.lt.s32.totalorder %s32_s25, %s32_s25 }
   0xb   :  { %p756_p3 = scmp.ne.s32.totalorder %s32_s25, %s755_s10  ;;  %p761_p5 = scmp.lt.s32.totalorder %s755_s10, %s755_s10 }
   0xd   :  { %p762_p6 = por %p761_p5, %p760_p4 }
   0xf   :  { %p763_p7 = pnand %p762_p6, %p756_p3 }
  0x11   :  { %766 = shalt.err (!%p763_p7)
}
  0x12   :  { %s864_s11 = smov 64   ;;  %s865_s12 = smov 4  }
  0x13   :  { %37 = dma.hbm_to_vmem [thread:$0]  %s1034_s1, 1024, %s32_s25, [#allocation6], %s864_s11, %s864_s11, %s865_s12  }
  0x14   :  { %s866_s15 = smov [#allocation2]   ;;  %s867_s17 = smov [#allocation7]  }
  0x15   :  { %s22_s16 = sshll.u32 %s866_s15, 4  ;;  %s45_s18 = sshll.u32 %s867_s17, 4  ;;  %s23_s16 = int_to_ptr.vmem [resolvable:$true] %s22_s16  ;;  %s46_s18 = int_to_ptr.vmem [resolvable:$true] %s45_s18 }
  0x16   :  { %s767_s21 = scalar_lea.hbm %s1033_s0, 64 }
  0x17   :  { %p768_p8 = scmp.ne.s32.totalorder %s1033_s0, %s767_s21  ;;  %p771_p9 = scmp.lt.u32.totalorder %s767_s21, %s1033_s0 }
  0x19   :  { %p773_p10 = pnand %p771_p9, %p768_p8 }
  0x1b   :  { %776 = shalt.err (!%p773_p10)
}
  0x1c   :  { %s777_s1 = scalar_lea.vmem %s23_s16, 64  ;;  %p782_p12 = scmp.lt.s32.totalorder %s23_s16, %s23_s16 }
  0x1d   :  { %p778_p11 = scmp.ne.s32.totalorder %s23_s16, %s777_s1  ;;  %p783_p13 = scmp.lt.s32.totalorder %s777_s1, %s777_s1 }
  0x1f   :  { %p784_p0 = por %p783_p13, %p782_p12 }
  0x21   :  { %p785_p1 = pnand %p784_p0, %p778_p11 }
  0x23   :  { %788 = shalt.err (!%p785_p1)
}
  0x24   :  { %25 = dma.hbm_to_vmem [thread:$0]  %s1033_s0, 64, %s23_s16, [#allocation3]  }
  0x25   :  { %s789_s30 = scalar_lea.hbm %s1036_s3, 2048 }
  0x26   :  { %p790_p2 = scmp.ne.s32.totalorder %s1036_s3, %s789_s30  ;;  %p793_p3 = scmp.lt.u32.totalorder %s789_s30, %s1036_s3 }
  0x28   :  { %p795_p4 = pnand %p793_p3, %p790_p2 }
  0x2a   :  { %798 = shalt.err (!%p795_p4)
}
  0x2b   :  { %s799_s14 = scalar_lea.vmem %s46_s18, 2048  ;;  %p804_p6 = scmp.lt.s32.totalorder %s46_s18, %s46_s18 }
  0x2c   :  { %p800_p5 = scmp.ne.s32.totalorder %s46_s18, %s799_s14  ;;  %p805_p7 = scmp.lt.s32.totalorder %s799_s14, %s799_s14 }
  0x2e   :  { %p806_p8 = por %p805_p7, %p804_p6 }
  0x30   :  { %p807_p9 = pnand %p806_p8, %p800_p5 }
  0x32   :  { %810 = shalt.err (!%p807_p9)
}
  0x33   :  { %51 = dma.hbm_to_vmem [thread:$0]  %s1036_s3, 2048, %s46_s18, [#allocation6], %s864_s11, %s864_s11, %s865_s12  }
  0x34   :  { %s868_s16 = smov [#allocation8]   ;;  %s811_s21 = scalar_lea.hbm %s1038_s5, 1024 }
  0x35   :  { %s59_s17 = sshll.u32 %s868_s16, 4  ;;  %p812_p10 = scmp.ne.s32.totalorder %s1038_s5, %s811_s21  ;;  %s60_s17 = int_to_ptr.vmem [resolvable:$true] %s59_s17 }
  0x36   :  { %p815_p11 = scmp.lt.u32.totalorder %s811_s21, %s1038_s5 }
  0x38   :  { %p817_p12 = pnand %p815_p11, %p812_p10 }
  0x3a   :  { %820 = shalt.err (!%p817_p12)
}
  0x3b   :  { %s821_s1 = scalar_lea.vmem %s60_s17, 1024  ;;  %p826_p0 = scmp.lt.s32.totalorder %s60_s17, %s60_s17 }
  0x3c   :  { %p822_p13 = scmp.ne.s32.totalorder %s60_s17, %s821_s1  ;;  %p827_p1 = scmp.lt.s32.totalorder %s821_s1, %s821_s1 }
  0x3e   :  { %p828_p2 = por %p827_p1, %p826_p0 }
  0x40   :  { %p829_p3 = pnand %p828_p2, %p822_p13 }
  0x42   :  { %832 = shalt.err (!%p829_p3)
}
  0x43   :  { %65 = dma.hbm_to_vmem [thread:$0]  %s1038_s5, 1024, %s60_s17, [#allocation9], %s864_s11, %s864_s11, %s865_s12  }
  0x44   :  { %855 = dma.done.wait [#allocation3], 64  }
  0x45   :  { %856 = vsyncadd [#allocation3], 4294967232 }
  0x46   :  { %857 = dma.done.wait [#allocation6], 3072  }
  0x47   :  { %858 = vsyncadd [#allocation6], 4294964224 }
  0x48   :  { %859 = dma.done.wait [#allocation9], 1024  }
  0x49   :  { %860 = vsyncadd [#allocation9], 4294966272  ;;  %v869_v0 = vmov 0.0   ;;  %vm870_vm0 = vmmov 0   ;;  %v713_v1 = vld [vmem:[#allocation5] sm:$0xff]   ;;  %v714_v2 = vld [vmem:[#allocation5 + $0x8] sm:$0xff]  }
  0x4a   :  { %624 = vmatprep.subr.bf16.mxu0 %v869_v0  ;;  %640 = vmatprep.mubr.msk.bf16.mxu0 %vm870_vm0, %v869_v0  ;;  %v715_v3 = vld [vmem:[#allocation5 + $0x10] sm:$0xff]   ;;  %v721_v4 = vld [vmem:[#allocation7] sm:$0xff]   ;;  %v716_v5 = vld [vmem:[#allocation5 + $0x18] sm:$0xff]   ;;  %s871_s30 = smov [#allocation10]  }
  0x4b   :  { %644 = vmatprep.subr.bf16.mxu1 %v869_v0  ;;  %660 = vmatprep.mubr.msk.bf16.mxu1 %vm870_vm0, %v869_v0  ;;  %v722_v6 = vld [vmem:[#allocation7 + $0x8] sm:$0xff]   ;;  %v717_v7 = vld [vmem:[#allocation5 + $0x20] sm:$0xff]   ;;  %v723_v8 = vld [vmem:[#allocation7 + $0x10] sm:$0xff]   ;;  %s540_s8 = sshll.u32 %s871_s30, 4  ;;  %s541_s8 = int_to_ptr.vmem [resolvable:$true] %s540_s8 }
  0x4c   :  { %625 = vmatpush3.bf16.msra.mxu0 %v713_v1  ;;  %645 = vmatpush3.bf16.msra.mxu1 %v721_v4  ;;  %v718_v9 = vld [vmem:[#allocation5 + $0x28] sm:$0xff]   ;;  %v724_v10 = vld [vmem:[#allocation7 + $0x18] sm:$0xff]   ;;  %v719_v11 = vld [vmem:[#allocation5 + $0x30] sm:$0xff]   ;;  %p838_p5 = scmp.lt.s32.totalorder %s541_s8, %s541_s8 }
  0x4d   :  { %626 = vmatprep.subr.bf16.mxu0 %v869_v0  ;;  %646 = vmatprep.subr.bf16.mxu1 %v869_v0  ;;  %v725_v12 = vld [vmem:[#allocation7 + $0x20] sm:$0xff]   ;;  %v720_v13 = vld [vmem:[#allocation5 + $0x38] sm:$0xff]   ;;  %v726_v14 = vld [vmem:[#allocation7 + $0x28] sm:$0xff]  }
  0x4e   :  { %v81_v15 = vld [vmem:[#allocation2] sm:$0xf]  ;;  %v727_v16 = vld [vmem:[#allocation7 + $0x30] sm:$0xff]   ;;  %v729_v18 = vld [vmem:[#allocation7 + $0x40] sm:$0xff]  }
  0x4f   :  { %v728_v17 = vld [vmem:[#allocation7 + $0x38] sm:$0xff]   ;;  %v730_v19 = vld [vmem:[#allocation7 + $0x48] sm:$0xff]   ;;  %v731_v20 = vld [vmem:[#allocation7 + $0x50] sm:$0xff]  }
  0x50   :  { %627 = vmatpush3.bf16.msra.mxu0 %v714_v2  ;;  %647 = vmatpush3.bf16.msra.mxu1 %v722_v6  ;;  %v732_v21 = vld [vmem:[#allocation7 + $0x58] sm:$0xff]   ;;  %v733_v22 = vld [vmem:[#allocation7 + $0x60] sm:$0xff]   ;;  %v734_v23 = vld [vmem:[#allocation7 + $0x68] sm:$0xff]  }
  0x51   :  { %628 = vmatprep.subr.bf16.mxu0 %v869_v0  ;;  %648 = vmatprep.subr.bf16.mxu1 %v869_v0  ;;  %v551_v24 = vld [vmem:[%s1035_s2] ss:$0 sm:$0xff]  ;;  %v735_v31 = vld [vmem:[#allocation7 + $0x70] sm:$0xff]   ;;  %v737_v33 = vld [vmem:[#allocation8] sm:$0xff]  }
  0x52   :  { %v736_v32 = vld [vmem:[#allocation7 + $0x78] sm:$0xff]   ;;  %v738_v34 = vld [vmem:[#allocation8 + $0x8] sm:$0xff]   ;;  %v739_v35 = vld [vmem:[#allocation8 + $0x10] sm:$0xff]  }
  0x53   :  { %v740_v36 = vld [vmem:[#allocation8 + $0x18] sm:$0xff]   ;;  %v741_v37 = vld [vmem:[#allocation8 + $0x20] sm:$0xff]   ;;  %v742_v38 = vld [vmem:[#allocation8 + $0x28] sm:$0xff]  }
  0x54   :  { %629 = vmatpush3.bf16.msra.mxu0 %v715_v3  ;;  %649 = vmatpush3.bf16.msra.mxu1 %v723_v8  ;;  %v560_v39 = vld [vmem:[%s1037_s4] ss:$0 sm:$0xff]  ;;  %v743_v47 = vld [vmem:[#allocation8 + $0x30] sm:$0xff]   ;;  %v570_v49 = vld [vmem:[%s1037_s4 + $0x1] ss:$0 sm:$0xff]  ;;  %s833_s4 = scalar_lea.vmem %s541_s8, 128 }
  0x55   :  { %630 = vmatprep.subr.bf16.mxu0 %v869_v0  ;;  %650 = vmatprep.subr.bf16.mxu1 %v869_v0  ;;  %v744_v48 = vld [vmem:[#allocation8 + $0x38] sm:$0xff]   ;;  %p834_p4 = scmp.ne.s32.totalorder %s541_s8, %s833_s4  ;;  %p839_p6 = scmp.lt.s32.totalorder %s833_s4, %s833_s4 }
  0x56   :  { %v579_v57 = vld [vmem:[%s1039_s6] ss:$0 sm:$0xff] }
  0x57   :  { %p840_p7 = por %p839_p6, %p838_p5 }
  0x58   :  { %631 = vmatpush3.bf16.msra.mxu0 %v716_v5  ;;  %651 = vmatpush3.bf16.msra.mxu1 %v724_v10 }
  0x59   :  { %632 = vmatprep.subr.bf16.mxu0 %v869_v0  ;;  %652 = vmatprep.subr.bf16.mxu1 %v869_v0  ;;  %p841_p8 = pnand %p840_p7, %p834_p4 }
  0x5c   :  { %633 = vmatpush3.bf16.msra.mxu0 %v717_v7  ;;  %653 = vmatpush3.bf16.msra.mxu1 %v725_v12 }
  0x5d   :  { %634 = vmatprep.subr.bf16.mxu0 %v869_v0  ;;  %654 = vmatprep.subr.bf16.mxu1 %v869_v0 }
  0x60   :  { %635 = vmatpush3.bf16.msra.mxu0 %v718_v9  ;;  %655 = vmatpush3.bf16.msra.mxu1 %v726_v14 }
  0x61   :  { %636 = vmatprep.subr.bf16.mxu0 %v869_v0  ;;  %656 = vmatprep.subr.bf16.mxu1 %v869_v0 }
  0x64   :  { %637 = vmatpush3.bf16.msra.mxu0 %v719_v11  ;;  %657 = vmatpush3.bf16.msra.mxu1 %v727_v16 }
  0x65   :  { %638 = vmatprep.subr.bf16.mxu0 %v869_v0  ;;  %658 = vmatprep.subr.bf16.mxu1 %v869_v0 }
  0x68   :  { %639 = vmatpush3.bf16.msra.mxu0 %v720_v13  ;;  %659 = vmatpush3.bf16.msra.mxu1 %v728_v17 }
  0x69   :  { %664 = vmatprep.subr.bf16.mxu0 %v869_v0  ;;  %684 = vmatprep.subr.bf16.mxu1 %v869_v0 }
  0x6b   :  { %641 = vmatmul.mubr.bf16.vlgmr.msra.gmra.mrb[0].mxu0 %v81_v15 }
  0x6c   :  { %680 = vmatprep.mubr.msk.bf16.mxu0 %vm870_vm0, %v869_v0  ;;  %665 = vmatpush3.bf16.msra.mxu0 %v729_v18 }
  0x6d   :  { %666 = vmatprep.subr.bf16.mxu0 %v869_v0 }
  0x70   :  { %667 = vmatpush3.bf16.msra.mxu0 %v730_v19 }
  0x71   :  { %668 = vmatprep.subr.bf16.mxu0 %v869_v0 }
  0x74   :  { %669 = vmatpush3.bf16.msra.mxu0 %v731_v20 }
  0x75   :  { %670 = vmatprep.subr.bf16.mxu0 %v869_v0 }
  0x78   :  { %671 = vmatpush3.bf16.msra.mxu0 %v732_v21 }
  0x79   :  { %672 = vmatprep.subr.bf16.mxu0 %v869_v0 }
  0x7c   :  { %673 = vmatpush3.bf16.msra.mxu0 %v733_v22 }
  0x7d   :  { %674 = vmatprep.subr.bf16.mxu0 %v869_v0 }
  0x80   :  { %675 = vmatpush3.bf16.msra.mxu0 %v734_v23 }
  0x81   :  { %676 = vmatprep.subr.bf16.mxu0 %v869_v0 }
  0x84   :  { %677 = vmatpush3.bf16.msra.mxu0 %v735_v31 }
  0x85   :  { %678 = vmatprep.subr.bf16.mxu0 %v869_v0 }
  0x88   :  { %679 = vmatpush3.bf16.msra.mxu0 %v736_v32 }
 0x13e   :  { %v187_v25 = vpop.f32.mrb[0].mxu0 }
 0x13f   :  { %v188_v26 = vadd.f32 %v551_v24, %v187_v25  ;;  %v642_v27 = vpop.f32.mrb[1].mxu0 }
 0x140   :  { %v190_v28 = vpop.f32.mrb[2].mxu0 }
 0x141   :  { %v193_v29 = vpack.c.bf16 %v188_v26, %v188_v26  ;;  %v643_v30 = vpop.f32.mrb[3].mxu0 }
 0x143   :  { %661 = vmatmul.mubr.bf16.vlgmr.msra.gmra.mrb[0].mxu1 %v193_v29 }
 0x144   :  { %700 = vmatprep.mubr.msk.bf16.mxu1 %vm870_vm0, %v869_v0  ;;  %685 = vmatpush3.bf16.msra.mxu1 %v737_v33 }
 0x145   :  { %686 = vmatprep.subr.bf16.mxu1 %v869_v0 }
 0x148   :  { %687 = vmatpush3.bf16.msra.mxu1 %v738_v34 }
 0x149   :  { %688 = vmatprep.subr.bf16.mxu1 %v869_v0 }
 0x14c   :  { %689 = vmatpush3.bf16.msra.mxu1 %v739_v35 }
 0x14d   :  { %690 = vmatprep.subr.bf16.mxu1 %v869_v0 }
 0x150   :  { %691 = vmatpush3.bf16.msra.mxu1 %v740_v36 }
 0x151   :  { %692 = vmatprep.subr.bf16.mxu1 %v869_v0 }
 0x154   :  { %693 = vmatpush3.bf16.msra.mxu1 %v741_v37 }
 0x155   :  { %694 = vmatprep.subr.bf16.mxu1 %v869_v0 }
 0x158   :  { %695 = vmatpush3.bf16.msra.mxu1 %v742_v38 }
 0x159   :  { %696 = vmatprep.subr.bf16.mxu1 %v869_v0 }
 0x15c   :  { %697 = vmatpush3.bf16.msra.mxu1 %v743_v47 }
 0x15d   :  { %698 = vmatprep.subr.bf16.mxu1 %v869_v0 }
 0x160   :  { %699 = vmatpush3.bf16.msra.mxu1 %v744_v48 }
 0x216   :  { %v299_v40 = vpop.f32.mrb[0].mxu1 }
 0x217   :  { %v300_v41 = vadd.f32 %v560_v39, %v299_v40  ;;  %v662_v42 = vpop.f32.mrb[1].mxu1 }
 0x218   :  { %v302_v43 = vpop.f32.mrb[2].mxu1 }
 0x219   :  { %v305_v44 = vmax.f32 %v300_v41, 0.0  ;;  %v663_v45 = vpop.f32.mrb[3].mxu1 }
 0x21b   :  { %v306_v46 = vpack.c.bf16 %v305_v44, %v305_v44 }
 0x21d   :  { %681 = vmatmul.mubr.bf16.vlgmr.msra.gmra.mrb[4].mxu0 %v306_v46 }
 0x2f0   :  { %v414_v50 = vpop.f32.mrb[4].mxu0 }
 0x2f1   :  { %v415_v51 = vadd.f32 %v570_v49, %v414_v50  ;;  %v682_v52 = vpop.f32.mrb[5].mxu0 }
 0x2f2   :  { %v417_v53 = vpop.f32.mrb[6].mxu0 }
 0x2f3   :  { %v420_v54 = vmax.f32 %v415_v51, 0.0  ;;  %v683_v55 = vpop.f32.mrb[7].mxu0 }
 0x2f5   :  { %v421_v56 = vpack.c.bf16 %v420_v54, %v420_v54 }
 0x2f7   :  { %701 = vmatmul.mubr.bf16.vlgmr.msra.gmra.mrb[4].mxu1 %v421_v56 }
 0x3ca   :  { %v527_v58 = vpop.f32.mrb[4].mxu1 }
 0x3cb   :  { %v528_v59 = vadd.f32 %v579_v57, %v527_v58  ;;  %v702_v60 = vpop.f32.mrb[5].mxu1 }
 0x3cc   :  { %v530_v61 = vpop.f32.mrb[6].mxu1 }
 0x3cd   :  { %533 = vst [vmem:[#allocation10] sm:$0xff] %v528_v59  ;;  %v703_v62 = vpop.f32.mrb[7].mxu1 }
 0x3ce   :  { %844 = shalt.err (!%p841_p8)
}
 0x3cf   :  { %s845_s6 = scalar_lea.hbm %s1040_s7, 128 }
 0x3d0   :  { %p846_p9 = scmp.ne.s32.totalorder %s1040_s7, %s845_s6  ;;  %p849_p10 = scmp.lt.u32.totalorder %s845_s6, %s1040_s7 }
 0x3d2   :  { %p851_p11 = pnand %p849_p10, %p846_p9 }
 0x3d4   :  { %854 = shalt.err (!%p851_p11)
}
 0x3d5   :  { %543 = dma.vmem_to_hbm [thread:$0]  %s541_s8, 128, %s1040_s7, [#allocation4]  }
 0x3d6   :  { %861 = dma.done.wait [#allocation4], 128  }
 0x3d7   :  { %862 = vsyncadd [#allocation4], 4294967168 }
 0x3d8   :  { %547 = vsyncpa [#allocation3], 1 }
 0x3d9   :  { %548 = vsyncpa [#allocation6], 1 }
 0x3da   :  { %549 = vsyncpa [#allocation9], 1 }
 0x3db   :  { %550 = vsyncpa [#allocation4], 1 }

</bundles_post_ra>
